<compile_context>
chip_gen: v5e
topology: v5e:2x2
jax: 0.10.0
libtpu: 0.0.40
codegen_flags: <defaults>
</compile_context>

<pallas_src>
import jax
import jax.numpy as jnp
from jax.experimental import pallas as pl
from jax.experimental.pallas import tpu as pltpu

_LANES = 128
_SUBLANES = 8
_TILE_BUDGET_BYTES = 4 * 1024 * 1024
_PAD_SENTINEL = -1e30        # relu(sentinel + 0) == 0 -> padded lanes contribute nothing


def _margin_ranking_kernel(pred_ref, mmp_ref, out_ref, acc_ref):
    i = pl.program_id(1)                       # column-tile index within the split

    @pl.when(i == 0)
    def _init():
        acc_ref[...] = jnp.zeros_like(acc_ref)

    # hinge_{r,j} = max(0, margin - pos_r + pred_{r,j});  mmp = margin - pos  (1, tile_c)
    hinge = jnp.maximum(pred_ref[...] + mmp_ref[...], 0.0)      # (n_ex, tile_c)
    acc_ref[...] = acc_ref[...] + hinge                          # pure VALU accumulate

    @pl.when(i == pl.num_programs(1) - 1)
    def _finalize():
        total = jnp.sum(acc_ref[...], keepdims=True)             # single cross-lane reduce
        out_ref[...] = jnp.broadcast_to(total[None], (1, 1, _LANES))


def _num_splits_for_device():
    """2 TensorCores per device on v4 / v5p / v7x; 1 on v5e / v6e."""
    try:
        kind = jax.devices()[0].device_kind.lower()
    except Exception:
        return 1
    return 2 if ("v7" in kind or "v4" in kind or "v5p" in kind) else 1


def margin_ranking_loss(predict, target, margin=0.0):
    """predict: (bs, num_heads, n_ex) or (bs, n_ex) float; target: (bs,) int."""
    predict = jnp.asarray(predict, jnp.float32)
    target = jnp.asarray(target, jnp.int32)

    if predict.ndim == 2:
        predict = predict[:, None, :]
    bs, num_heads, n_ex = predict.shape
    if n_ex < 2:
        raise ValueError("MarginRankingLoss needs n_ex >= 2 (no negatives otherwise).")
    rows = bs * num_heads

    pred2d = predict.reshape(rows, n_ex)
    # target.unsqueeze(1).repeat(1, num_heads).view(-1) -> per-row target
    tgt_row = jnp.repeat(target, num_heads)                            # (rows,)
    # Positive score per row: one tiny XLA gather; the kernel never sees targets.
    pos = jnp.take_along_axis(pred2d, tgt_row[:, None], axis=1)[:, 0]  # (rows,)
    mmp_row = (jnp.float32(margin) - pos)[None, :]                     # (1, rows)

    # Lane-dense layout: rows -> lanes; n_ex (4/16) on sublanes.
    pred_t = pred2d.T                                                  # (n_ex, rows)

    # Tile sizing under a per-tile VMEM budget (double-buffered inputs + accumulator).
    p8 = -(-n_ex // _SUBLANES) * _SUBLANES
    bytes_per_col = 4 * (3 * p8 + 2 * _SUBLANES)
    max_tile_c = max(_LANES, (_TILE_BUDGET_BYTES // bytes_per_col) // _LANES * _LANES)

    num_splits = max(1, min(_num_splits_for_device(), -(-rows // _LANES)))
    cols_per_split = -(-rows // num_splits)
    tile_c = min(max_tile_c, -(-cols_per_split // _LANES) * _LANES)
    tiles_per_split = -(-cols_per_split // tile_c)
    padded_cols = num_splits * tiles_per_split * tile_c

    pad = padded_cols - rows
    # Sentinel padding: relu(-1e30 + 0) == 0, so padded lanes add exactly 0 and the
    # kernel needs no validity mask.
    pred_t = jnp.pad(pred_t, ((0, 0), (0, pad)), constant_values=_PAD_SENTINEL)
    mmp_row = jnp.pad(mmp_row, ((0, 0), (0, pad)), constant_values=0.0)

    partials = pl.pallas_call(
        _margin_ranking_kernel,
        out_shape=jax.ShapeDtypeStruct((num_splits, 1, _LANES), jnp.float32),
        grid_spec=pltpu.PrefetchScalarGridSpec(
            num_scalar_prefetch=0,
            grid=(num_splits, tiles_per_split),
            in_specs=[
                pl.BlockSpec((n_ex, tile_c),
                             lambda c, i: (0, c * tiles_per_split + i)),
                pl.BlockSpec((1, tile_c),
                             lambda c, i: (0, c * tiles_per_split + i)),
            ],
            out_specs=pl.BlockSpec((1, 1, _LANES), lambda c, i: (c, 0, 0)),
            scratch_shapes=[pltpu.VMEM((n_ex, tile_c), jnp.float32)],
        ),
        compiler_params=pltpu.CompilerParams(
            dimension_semantics=("parallel", "arbitrary"),
            vmem_limit_bytes=32 * 1024 * 1024,
        ),
    )(pred_t, mmp_row)

    # Kernel summed the hinge over ALL j, including j == target where the hinge is
    # exactly max(0, margin).  Correct analytically and normalize by the element count.
    total = jnp.sum(partials[:, 0, 0])
    total = total - jnp.float32(rows * max(0.0, float(margin)))
    return total / jnp.float32(rows * (n_ex - 1))


def _reference(predict, target, margin=0.0):
    """Pure-JAX reference mirroring the PyTorch module."""
    predict = jnp.asarray(predict, jnp.float32)
    if predict.ndim == 2:
        predict = predict[:, None, :]
    bs, num_heads, n_ex = predict.shape
    pred2d = predict.reshape(bs * num_heads, n_ex)
    tgt = jnp.repeat(jnp.asarray(target, jnp.int32), num_heads)
    pos = pred2d[jnp.arange(bs * num_heads), tgt][:, None]
    mask = jnp.ones_like(pred2d, dtype=bool).at[
        jnp.arange(bs * num_heads), tgt].set(False)
    hinge = jnp.maximum(0.0, margin - (pos - pred2d))
    return jnp.sum(jnp.where(mask, hinge, 0.0)) / (bs * num_heads * (n_ex - 1))


if __name__ == "__main__":
    key = jax.random.PRNGKey(0)

    # Test 1: (bs, num_heads, n_ex) = (2, 4, 4), positive margin.
    k1, k2, key = (*jax.random.split(key, 2), key)
    predict = jax.random.normal(k1, (2, 4, 4), dtype=jnp.float32)
    target = jax.random.randint(k2, (2,), 0, 4, dtype=jnp.int32)
    loss = jax.block_until_ready(margin_ranking_loss(predict, target, margin=0.2))
    ref = jax.block_until_ready(_reference(predict, target, margin=0.2))
    assert jnp.allclose(loss, ref, atol=1e-5, rtol=1e-5), (loss, ref)

    # Test 2: 2-D predict path, n_ex = 16, zero margin.
    k1, k2, key = (*jax.random.split(key, 2), key)
    predict2 = jax.random.normal(k1, (3, 16), dtype=jnp.float32)
    target2 = jax.random.randint(k2, (3,), 0, 16, dtype=jnp.int32)
    loss2 = jax.block_until_ready(margin_ranking_loss(predict2, target2, margin=0.0))
    ref2 = jax.block_until_ready(_reference(predict2, target2, margin=0.0))
    assert jnp.allclose(loss2, ref2, atol=1e-5, rtol=1e-5), (loss2, ref2)

    # Test 3: negative margin (exercises the max(0, margin) analytic correction).
    k1, k2, key = (*jax.random.split(key, 2), key)
    predict3 = jax.random.normal(k1, (2, 2, 4), dtype=jnp.float32)
    target3 = jax.random.randint(k2, (2,), 0, 4, dtype=jnp.int32)
    loss3 = jax.block_until_ready(margin_ranking_loss(predict3, target3, margin=-0.1))
    ref3 = jax.block_until_ready(_reference(predict3, target3, margin=-0.1))
    assert jnp.allclose(loss3, ref3, atol=1e-5, rtol=1e-5), (loss3, ref3)

    print("KERNEL_OK")
</pallas_src>

<mosaic_0001>
module attributes {stable_mosaic.version = 11 : i64} {
  func.func @_margin_ranking_kernel(%arg0: i32, %arg1: i32, %arg2: memref<4x128xf32, #tpu.memory_space<vmem>>, %arg3: memref<1x128xf32, #tpu.memory_space<vmem>>, %arg4: memref<1x1x128xf32, #tpu.memory_space<vmem>>, %arg5: memref<4x128xf32, #tpu.memory_space<vmem>>) attributes {dimension_semantics = [#tpu.dimension_semantics<parallel>, #tpu.dimension_semantics<arbitrary>], iteration_bounds = array<i64: 1, 1>, scalar_prefetch = 0 : i64, scratch_operands = 1 : i64, tpu.core_type = #tpu.core_type<tc>, window_params = [{transform_indices = @transform_0, window_bounds = array<i64: 4, 128>}, {transform_indices = @transform_1, window_bounds = array<i64: 1, 128>}, {transform_indices = @transform_2, window_bounds = array<i64: 1, 1, 128>}]} {
    %c0_i32 = arith.constant 0 : i32
    %0 = arith.cmpi eq, %arg1, %c0_i32 : i32
    %1 = arith.extui %0 : i1 to i32
    %c0_i32_0 = arith.constant 0 : i32
    %2 = arith.cmpi ne, %1, %c0_i32_0 : i32
    scf.if %2 {
      %cst_10 = arith.constant 0.000000e+00 : f32
      %15 = vector.broadcast %cst_10 : f32 to vector<4x128xf32>
      %c0_11 = arith.constant 0 : index
      %c0_12 = arith.constant 0 : index
      %16 = vector.load %arg5[%c0_11, %c0_12] : memref<4x128xf32, #tpu.memory_space<vmem>>, vector<4x128xf32>
      tpu.vector_store %arg5[%c0_11, %c0_12], %15 {strides = array<i32>} : memref<4x128xf32, #tpu.memory_space<vmem>>, vector<4x128xf32>,
    } else {
    }
    %c0 = arith.constant 0 : index
    %c0_1 = arith.constant 0 : index
    %3 = vector.load %arg2[%c0, %c0_1] : memref<4x128xf32, #tpu.memory_space<vmem>>, vector<4x128xf32>
    %c0_2 = arith.constant 0 : index
    %c0_3 = arith.constant 0 : index
    %4 = vector.load %arg3[%c0_2, %c0_3] : memref<1x128xf32, #tpu.memory_space<vmem>>, vector<1x128xf32>
    %5 = vector.broadcast %4 : vector<1x128xf32> to vector<4x128xf32>
    %6 = arith.addf %3, %5 : vector<4x128xf32>
    %cst = arith.constant 0.000000e+00 : f32
    %7 = vector.broadcast %cst : f32 to vector<4x128xf32>
    %8 = arith.maximumf %6, %7 : vector<4x128xf32>
    %c0_4 = arith.constant 0 : index
    %c0_5 = arith.constant 0 : index
    %9 = vector.load %arg5[%c0_4, %c0_5] : memref<4x128xf32, #tpu.memory_space<vmem>>, vector<4x128xf32>
    %10 = arith.addf %9, %8 : vector<4x128xf32>
    %c0_6 = arith.constant 0 : index
    %c0_7 = arith.constant 0 : index
    %11 = vector.load %arg5[%c0_6, %c0_7] : memref<4x128xf32, #tpu.memory_space<vmem>>, vector<4x128xf32>
    tpu.vector_store %arg5[%c0_6, %c0_7], %10 {strides = array<i32>} : memref<4x128xf32, #tpu.memory_space<vmem>>, vector<4x128xf32>,
    %c0_i32_8 = arith.constant 0 : i32
    %12 = arith.cmpi eq, %arg1, %c0_i32_8 : i32
    %13 = arith.extui %12 : i1 to i32
    %c0_i32_9 = arith.constant 0 : i32
    %14 = arith.cmpi ne, %13, %c0_i32_9 : i32
    scf.if %14 {
      %c0_10 = arith.constant 0 : index
      %c0_11 = arith.constant 0 : index
      %15 = vector.load %arg5[%c0_10, %c0_11] : memref<4x128xf32, #tpu.memory_space<vmem>>, vector<4x128xf32>
      %16 = vector.shape_cast %15 : vector<4x128xf32> to vector<1x4x128xf32>
      %cst_12 = arith.constant dense<0.000000e+00> : vector<1xf32>
      %17 = vector.multi_reduction <add>, %16, %cst_12 [1, 2] : vector<1x4x128xf32> to vector<1xf32>
      %18 = vector.shape_cast %17 : vector<1xf32> to vector<1x1x1xf32>
      %19 = vector.extract %18[0, 0, 0] : f32 from vector<1x1x1xf32>
      %20 = vector.broadcast %19 : f32 to vector<1x1xf32>
      %21 = vector.shape_cast %20 : vector<1x1xf32> to vector<1x1x1xf32>
      %22 = vector.shape_cast %21 : vector<1x1x1xf32> to vector<1x1x1xf32>
      %23 = vector.broadcast %22 : vector<1x1x1xf32> to vector<1x1x128xf32>
      %c0_13 = arith.constant 0 : index
      %c0_14 = arith.constant 0 : index
      %c0_15 = arith.constant 0 : index
      %24 = vector.load %arg4[%c0_13, %c0_14, %c0_15] : memref<1x1x128xf32, #tpu.memory_space<vmem>>, vector<1x1x128xf32>
      tpu.vector_store %arg4[%c0_13, %c0_14, %c0_15], %23 {strides = array<i32>} : memref<1x1x128xf32, #tpu.memory_space<vmem>>, vector<1x1x128xf32>,
    } else {
    }
    return
  }
  func.func @transform_0(%arg0: i32, %arg1: i32) -> (i32, i32) {
    %c1_i32 = arith.constant 1 : i32
    %0 = arith.muli %arg0, %c1_i32 : i32
    %1 = arith.addi %0, %arg1 : i32
    %c0_i32 = arith.constant 0 : i32
    %c0_i32_0 = arith.constant 0 : i32
    return %c0_i32, %1 : i32, i32
  }
  func.func @transform_1(%arg0: i32, %arg1: i32) -> (i32, i32) {
    %c1_i32 = arith.constant 1 : i32
    %0 = arith.muli %arg0, %c1_i32 : i32
    %1 = arith.addi %0, %arg1 : i32
    %c0_i32 = arith.constant 0 : i32
    %c0_i32_0 = arith.constant 0 : i32
    return %c0_i32, %1 : i32, i32
  }
  func.func @transform_2(%arg0: i32, %arg1: i32) -> (i32, i32, i32) {
    %c0_i32 = arith.constant 0 : i32
    %c0_i32_0 = arith.constant 0 : i32
    %c0_i32_1 = arith.constant 0 : i32
    return %arg0, %c0_i32, %c0_i32_0 : i32, i32, i32
  }
}

</mosaic_0001>

<bundles_post_ra>
// kernel: tpu_custom_call.1
= control target key start
LH: loop header
LB: loop body
LE: loop exit
PB: predicated region body
PF: predicated region fallthrough
CT: control target
= control target key end

     0   :  { %7 = vsyncpa [#allocation4], 0  ;;  %s210_s0 = inlined_call_operand.hbm [shape: f32[4,128], index: 0, kind: input, shape index: {}]   ;;  %s211_s1 = inlined_call_operand.hbm [shape: f32[1,128], index: 1, kind: input, shape index: {}]   ;;  %s212_s2 = inlined_call_operand.hbm [shape: f32[1,1,128], index: 2, kind: output, shape index: {}]  }
   0x1   :  { %8 = vsyncpa [#allocation7], 0 }
   0x2   :  { %9 = vsyncpa [#allocation5], 0  ;;  %s18_s11 = sshll.u32 %s210_s0, 4  ;;  %s182_s12 = smov [#allocation3]   ;;  %s19_s11 = int_to_ptr.hbm [resolvable:$true] %s18_s11 }
   0x3   :  { %s20_s13 = sshll.u32 %s182_s12, 4  ;;  %s31_s16 = sshll.u32 %s211_s1, 4  ;;  %s21_s13 = int_to_ptr.vmem [resolvable:$true] %s20_s13  ;;  %s32_s16 = int_to_ptr.hbm [resolvable:$true] %s31_s16 }
   0x4   :  { %23 = dma.hbm_to_vmem [thread:$0]  %s19_s11, 64, %s21_s13, [#allocation4]  }
   0x5   :  { %s183_s17 = smov [#allocation6]  }
   0x6   :  { %s33_s18 = sshll.u32 %s183_s17, 4  ;;  %s34_s18 = int_to_ptr.vmem [resolvable:$true] %s33_s18 }
   0x7   :  { %36 = dma.hbm_to_vmem [thread:$0]  %s32_s16, 16, %s34_s18, [#allocation7]  }
   0x8   :  { %176 = dma.done.wait [#allocation4], 64  }
   0x9   :  { %177 = vsyncadd [#allocation4], 4294967232 }
   0xa   :  { %178 = dma.done.wait [#allocation7], 16  }
   0xb   :  { %179 = vsyncadd [#allocation7], 4294967280  ;;  %v184_v0 = vmov 0.0   ;;  %v52_v1 = vld [vmem:[#allocation3] sm:$0xf]  ;;  %vm66_vm0 = vcmask 1043456  }
   0xc   :  { %51 = vst [vmem:[#allocation2] sm:$0xf] %v184_v0  ;;  %v103_v2 = vld [vmem:[#allocation6] ss:$0 sm:$0xff]  ;;  %s185_s0 = smov [#allocation8]   ;;  %s86_s21 = sshll.u32 %s212_s2, 4  ;;  %s87_s21 = int_to_ptr.hbm [resolvable:$true] %s86_s21 }
   0xd   :  { %v57_v3 = vadd.f32 %v103_v2, %v52_v1  ;;  %s84_s1 = sshll.u32 %s185_s0, 4  ;;  %s85_s1 = int_to_ptr.vmem [resolvable:$true] %s84_s1 }
   0xf   :  { %v58_v5 = vmax.f32 %v57_v3, 0.0 }
  0x13   :  { %v59_v4 = vld [vmem:[#allocation2] sm:$0xf] }
  0x14   :  { %v60_v6 = vadd.f32 %v59_v4, %v58_v5 }
  0x16   :  { %61 = vst [vmem:[#allocation2] sm:$0xf] %v60_v6 }
  0x1d   :  { %v65_v7 = vld [vmem:[#allocation2] sm:$0xf] }
  0x1e   :  { %v67_v8 = vsel %vm66_vm0, %v65_v7, 0.0 }
  0x1f   :  { %68 = vadd.xlane.f32.xlu0 %v67_v8 }
  0x92   :  { %v69_v9 = vpop.xlane.xlu0 %68 }
  0x93   :  { %v70_v10 = vrot.slane %v69_v9, 4 }
  0x95   :  { %v71_v11 = vadd.f32 %v70_v10, %v69_v9 }
  0x97   :  { %v72_v12 = vrot.slane %v71_v11, 2 }
  0x99   :  { %v73_v13 = vadd.f32 %v72_v12, %v71_v11 }
  0x9b   :  { %v74_v14 = vrot.slane %v73_v13, 1 }
  0x9d   :  { %v75_v15 = vadd.f32 %v74_v14, %v73_v13 }
  0x9f   :  { %97 = vpush %v75_v15 }
  0xd0   :  { %s98_s22 = spop %97 }
  0xd1   :  { %v77_v16 = vstv %s98_s22 }
  0xd2   :  { %78 = vst [vmem:[#allocation8] sm:$0x1] %v77_v16 }
  0xd3   :  { %89 = dma.vmem_to_hbm [thread:$0]  %s85_s1, 16, %s87_s21, [#allocation5]  }
  0xd4   :  { %180 = dma.done.wait [#allocation5], 16  }
  0xd5   :  { %181 = vsyncadd [#allocation5], 4294967280 }
  0xd6   :  { %94 = vsyncpa [#allocation4], 1 }
  0xd7   :  { %95 = vsyncpa [#allocation7], 1 }
  0xd8   :  { %96 = vsyncpa [#allocation5], 1 }

</bundles_post_ra>
